<compile_context>
chip_gen: v7x
topology: tpu7x:2x2x1
jax: 0.10.0
libtpu: 0.0.40
codegen_flags: <defaults>
</compile_context>

<pallas_src>
import jax
import jax.numpy as jnp
from jax.experimental import pallas as pl
from jax.experimental.pallas import tpu as pltpu

LANE = 128                              # fast (lane) axis width
SUBLANE = 8                             # f32 sublane granularity
TARGET_BLOCK_BYTES = 4 * 1024 * 1024    # ~4 MiB block -> ~16 MiB pipelined
VMEM_LIMIT_BYTES = 32 * 1024 * 1024     # safe scoped limit on v5e/v6e/v7x
MIN_GRID_PROGRAMS = 2                   # keep both v7x TensorCores streaming


def _hsigmoid_kernel(x_ref, o_ref):
    x = x_ref[...]
    # relu6(x + 3) / 6 — same formulation as the reference / torch.
    y = jnp.minimum(jnp.maximum(x + 3.0, 0.0), 6.0) / 6.0
    o_ref[...] = y.astype(o_ref.dtype)


def _round_up(v: int, m: int) -> int:
    return ((v + m - 1) // m) * m


@jax.jit
def hsigmoid(x: jax.Array) -> jax.Array:
    """Elementwise hard-sigmoid: ReLU6(x + 3) / 6 (torch Hsigmoid semantics)."""
    orig_shape = x.shape
    dtype = x.dtype
    # Restrict to float dtypes — the hsigmoid math is not meaningful for ints.
    if not jnp.issubdtype(dtype, jnp.floating):
        raise TypeError(f"hsigmoid expects a floating dtype, got {dtype}")

    flat = x.reshape(-1)
    n = flat.shape[0]

    # Split at the 128-aligned boundary.  The prefix goes through the Pallas
    # kernel; the (<128-element) tail is a handful of scalar-ish jnp ops.
    n_main = (n // LANE) * LANE
    n_tail = n - n_main

    pieces = []

    if n_main > 0:
        rows = n_main // LANE
        main2d = flat[:n_main].reshape(rows, LANE)

        itemsize = jnp.dtype(dtype).itemsize
        # packed-sublane quantum: 8 rows for f32, 16 for bf16/f16.
        sub_pack = max(SUBLANE, SUBLANE * 4 // itemsize)

        # Keep block *bytes* roughly constant across dtypes.
        row_tile = max(sub_pack, TARGET_BLOCK_BYTES // (LANE * itemsize))
        row_tile = (row_tile // sub_pack) * sub_pack
        # Guarantee >= MIN_GRID_PROGRAMS grid programs when possible (v7x 2-TC).
        split_tile = _round_up(pl.cdiv(rows, MIN_GRID_PROGRAMS), sub_pack)
        row_tile = min(row_tile, split_tile, rows)
        # Note: if rows < sub_pack then row_tile == rows == full dim, which is
        # a legal block shape; Pallas masks any partial trailing grid block.

        grid = (pl.cdiv(rows, row_tile),)

        out2d = pl.pallas_call(
            _hsigmoid_kernel,
            out_shape=jax.ShapeDtypeStruct((rows, LANE), dtype),
            grid_spec=pltpu.PrefetchScalarGridSpec(
                num_scalar_prefetch=0,
                grid=grid,
                in_specs=[pl.BlockSpec((row_tile, LANE), lambda i: (i, 0))],
                out_specs=pl.BlockSpec((row_tile, LANE), lambda i: (i, 0)),
            ),
            compiler_params=pltpu.CompilerParams(
                dimension_semantics=("parallel",),
                vmem_limit_bytes=VMEM_LIMIT_BYTES,
            ),
        )(main2d)
        pieces.append(out2d.reshape(-1))

    if n_tail > 0:
        tail = flat[n_main:]
        pieces.append(jnp.clip(tail + 3.0, 0.0, 6.0) / 6.0)

    out_flat = pieces[0] if len(pieces) == 1 else jnp.concatenate(pieces, axis=0)
    return out_flat.reshape(orig_shape)


def hsigmoid_ref(x: jax.Array) -> jax.Array:
    """Pure-JAX reference: relu6(x + 3) / 6."""
    return jnp.clip(x + 3.0, 0.0, 6.0) / 6.0


if __name__ == "__main__":
    key = jax.random.PRNGKey(0)

    # NCHW input consistent with a small conv feature map (128-aligned path).
    x = jax.random.normal(key, (2, 4, 16, 16), dtype=jnp.float32) * 4.0
    y = hsigmoid(x)
    jax.block_until_ready(y)
    y_ref = hsigmoid_ref(x)
    assert y.shape == x.shape and y.dtype == x.dtype
    assert jnp.allclose(y, y_ref, atol=1e-6, rtol=1e-6), "mismatch vs reference"

    # Unaligned element count (exercises the prefix-kernel + jnp-tail path).
    x2 = jax.random.normal(jax.random.PRNGKey(1), (3, 5, 7, 11), dtype=jnp.float32)
    y2 = hsigmoid(x2)
    jax.block_until_ready(y2)
    assert jnp.allclose(y2, hsigmoid_ref(x2), atol=1e-6, rtol=1e-6), "mismatch (unaligned)"

    print("KERNEL_OK")
</pallas_src>

<mosaic_0001>
module attributes {stable_mosaic.version = 11 : i64} {
  func.func @_hsigmoid_kernel(%arg0: i32, %arg1: memref<8x128xf32, #tpu.memory_space<vmem>>, %arg2: memref<8x128xf32, #tpu.memory_space<vmem>>) attributes {dimension_semantics = [#tpu.dimension_semantics<parallel>], iteration_bounds = array<i64: 2>, scalar_prefetch = 0 : i64, scratch_operands = 0 : i64, tpu.core_type = #tpu.core_type<tc>, window_params = [{transform_indices = @transform_0, window_bounds = array<i64: 8, 128>}, {transform_indices = @transform_1, window_bounds = array<i64: 8, 128>}]} {
    %c0 = arith.constant 0 : index
    %c0_0 = arith.constant 0 : index
    %0 = vector.load %arg1[%c0, %c0_0] : memref<8x128xf32, #tpu.memory_space<vmem>>, vector<8x128xf32>
    %cst = arith.constant 3.000000e+00 : f32
    %1 = vector.broadcast %cst : f32 to vector<8x128xf32>
    %2 = arith.addf %0, %1 : vector<8x128xf32>
    %cst_1 = arith.constant 0.000000e+00 : f32
    %3 = vector.broadcast %cst_1 : f32 to vector<8x128xf32>
    %4 = arith.maximumf %2, %3 : vector<8x128xf32>
    %cst_2 = arith.constant 6.000000e+00 : f32
    %5 = vector.broadcast %cst_2 : f32 to vector<8x128xf32>
    %6 = arith.minimumf %4, %5 : vector<8x128xf32>
    %cst_3 = arith.constant 6.000000e+00 : f32
    %7 = vector.broadcast %cst_3 : f32 to vector<8x128xf32>
    %8 = arith.divf %6, %7 : vector<8x128xf32>
    %c0_4 = arith.constant 0 : index
    %c0_5 = arith.constant 0 : index
    %9 = vector.load %arg2[%c0_4, %c0_5] : memref<8x128xf32, #tpu.memory_space<vmem>>, vector<8x128xf32>
    tpu.vector_store %arg2[%c0_4, %c0_5], %8 {strides = array<i32>} : memref<8x128xf32, #tpu.memory_space<vmem>>, vector<8x128xf32>,
    return
  }
  func.func @transform_0(%arg0: i32) -> (i32, i32) {
    %c0_i32 = arith.constant 0 : i32
    %c0_i32_0 = arith.constant 0 : i32
    return %arg0, %c0_i32 : i32, i32
  }
  func.func @transform_1(%arg0: i32) -> (i32, i32) {
    %c0_i32 = arith.constant 0 : i32
    %c0_i32_0 = arith.constant 0 : i32
    return %arg0, %c0_i32 : i32, i32
  }
}

</mosaic_0001>

<bundles_post_ra>
// kernel: hsigmoid.1
= control target key start
LH: loop header
LB: loop body
LE: loop exit
PB: predicated region body
PF: predicated region fallthrough
CT: control target
= control target key end

     0   :  { %s193_s6 = smov 0   ;;  %s213_s0 = inlined_call_operand.vmem [shape: f32[16,128], index: 0, kind: input, shape index: {}]   ;;  %s214_s1 = inlined_call_operand.vmem [shape: f32[16,128], index: 1, kind: output, shape index: {}]  }
   0x1 LB: > { %s172_s7 = sadd.s32 4294967295, %s195_s6   ;;  %p176_p0 = scmp.ge.s32.totalorder %s195_s6, 1  ;;  %s195_s6 = sphi %s193_s6, %s11_s6  }
   0x2   : > { %p86_p1 = scmp.lt.s32.totalorder %s195_s6, 3 }
   0x4   : > { %p87_p2 = pnand %p176_p0, %p86_p1 }
   0x5   : > { %p104_p3 = scmp.lt.s32.totalorder (!%p87_p2), %s172_s7, 1 }
   0x6   : > { %90 = sbr.rel (%p87_p2) target bundleno = 26 (0x1a), region = 24 }
   0xd   : > { %s216_s7 = smov (!%p104_p3, %s172_s7), 1 }
   0xe   : > { %s177_s8 = sshll.u32 %s216_s7, 3 }
   0xf   : > { %s107_s11 = scalar_lea.vmem %s213_s0, %s177_s8  ;;  %s111_s14 = scalar_lea.vmem %s214_s1, %s177_s8 }
  0x10   : > { %v112_v0 = vld [vmem:[%s107_s11] sm:$0xff] }
  0x11   : > { %v113_v1 = vadd.f32 3.0, %v112_v0 }
  0x13   : > { %v114_v2 = vmax.f32 %v113_v1, 0.0 }
  0x15   : > { %v115_v3 = vmin.f32 %v114_v2, 6.0 }
  0x17   : > { %v117_v4 = vmul.f32 0.16666667, %v115_v3 }
  0x19   : > { %118 = vst [vmem:[%s111_s14] sm:$0xff] %v117_v4 }
  0x1a PF: > { %s11_s6 = sadd.s32 1, %s195_s6  }
  0x1b   : > { %p8_p4 = scmp.ge.s32.totalorder %s11_s6, 4  }
  0x1d   :  { %10 = sbr.rel (!%p8_p4) target bundleno = 1 (0x1), region = 54 }

</bundles_post_ra>
